<compile_context>
chip_gen: v6e
topology: v6e:2x2x1
jax: 0.10.0
libtpu: 0.0.40
codegen_flags: <defaults>
</compile_context>

<pallas_src>
import functools
from typing import List, NamedTuple, Optional

import jax
import jax.numpy as jnp
from jax import lax
from jax.experimental import pallas as pl
from jax.experimental.pallas import tpu as pltpu


def _round_up(x: int, m: int) -> int:
    return (x + m - 1) // m * m


class PackedTables(NamedTuple):
    packed: jax.Array        # [c_pad, d_pad] block-diagonal embedding tables
    row_offsets: jax.Array   # [F] int32 global row offset of each feature's block
    total_dim: int
    c_pad: int
    d_pad: int
    c_chunk: int


def pack_embedding_tables(tables: List[jax.Array],
                          table_dtype=jnp.float32) -> Optional[PackedTables]:
    """One-time block-diagonal packing (parameter-init time, NOT per forward call).

    table_dtype=jnp.bfloat16 halves table VMEM/HBM and runs the MXU at native bf16
    rate (the one-hot side is exact in bf16); default f32 matches PyTorch numerics.
    """
    if len(tables) == 0:
        return None
    cats = [int(t.shape[0]) for t in tables]
    dims = [int(t.shape[1]) for t in tables]
    total_dim = sum(dims)
    c_sum = sum(cats)
    d_pad = _round_up(total_dim, 128)          # lane-dense, unmasked output stores
    if c_sum <= 512:                           # small vocab: single contraction chunk
        c_pad = _round_up(c_sum, 8)
        c_chunk = c_pad
    else:                                      # large vocab: 256-wide contraction chunks
        c_chunk = 256
        c_pad = _round_up(c_sum, c_chunk)

    packed = jnp.zeros((c_pad, d_pad), table_dtype)
    row_offsets = []
    r = c = 0
    for t, nc, ne in zip(tables, cats, dims):
        packed = packed.at[r:r + nc, c:c + ne].set(t.astype(table_dtype))
        row_offsets.append(r)
        r += nc
        c += ne
    return PackedTables(packed, jnp.asarray(row_offsets, jnp.int32),
                        total_dim, c_pad, d_pad, c_chunk)


def _embedder_kernel(idx_ref, tab_ref, out_ref, *, c_chunk: int):
    """idx_ref: [tile_b, F] int32 (row offsets already folded in);
    tab_ref: [c_pad, tile_d] packed block-diagonal tables; out_ref: [tile_b, tile_d]."""
    idx = idx_ref[...]                                       # [tB, F] int32
    t_b, n_feat = idx.shape
    c_pad = tab_ref.shape[0]
    num_chunks = c_pad // c_chunk
    dt = tab_ref.dtype

    # Single hoisted iota; shifted (cheap VPU add) per chunk instead of regenerated.
    col0 = lax.broadcasted_iota(jnp.int32, (t_b, c_chunk), 1)

    def build_onehot(base):
        col = col0 + base
        # Fold the cast into the compare: feature blocks are disjoint, so summing the
        # exact 0/1 contributions equals the OR, and saves one full-slab VPU pass.
        oh = (col == idx[:, 0:1]).astype(dt)
        for f in range(1, n_feat):
            oh = oh + (col == idx[:, f:f + 1]).astype(dt)
        return oh                                            # [tB, c_chunk]

    if num_chunks == 1:
        out_ref[...] = jnp.dot(
            build_onehot(0), tab_ref[...], preferred_element_type=jnp.float32
        ).astype(out_ref.dtype)
    else:
        def body(k, acc):
            base = k * c_chunk
            oh = build_onehot(base)
            tab = tab_ref[pl.ds(pl.multiple_of(base, c_chunk), c_chunk), :]
            return acc + jnp.dot(oh, tab, preferred_element_type=jnp.float32)

        acc = lax.fori_loop(0, num_chunks, body,
                            jnp.zeros((t_b, out_ref.shape[1]), jnp.float32))
        out_ref[...] = acc.astype(out_ref.dtype)


def multi_feature_embed(t_features, packed: Optional[PackedTables], *,
                        tile_b_max: Optional[int] = None):
    """t_features: [B, F] integer categorical features; packed: pack_embedding_tables(...)."""
    if packed is None:
        # PyTorch: empty ModuleList -> return input unchanged.
        return t_features

    B, F = t_features.shape
    total_dim, c_pad, d_pad, c_chunk = (packed.total_dim, packed.c_pad,
                                        packed.d_pad, packed.c_chunk)

    # Fold per-feature row offsets into the indices here (tiny [B, F] int32 op) instead
    # of shipping a separate `off` input + BlockSpec + per-tile broadcast add.
    idx = t_features.astype(jnp.int32) + packed.row_offsets[None, :]

    # Batch tiling: multiple of 8 (sublanes); small-D configs get bigger tiles to
    # amortize the ~0.35us per-grid-step overhead; tile_b always divides b_pad.
    if tile_b_max is None:
        tile_b_max = 1024 if d_pad <= 256 else 512
    tile_b = min(tile_b_max, _round_up(B, 8))
    b_pad = _round_up(B, tile_b)
    if b_pad != B:
        idx = jnp.pad(idx, ((0, b_pad - B), (0, 0)))   # pad rows hit row 0; sliced off

    # D (output column) tiling: outer grid axis -> both v7x TensorCores get work even
    # at tiny batch, and the resident table block per step shrinks to (c_pad, tile_d).
    tile_d = d_pad
    if d_pad > 512:
        for cand in (512, 384, 256, 128):
            if d_pad % cand == 0:
                tile_d = cand
                break

    # Explicit VMEM budget: single-buffered table tile + double-buffered out/idx tiles
    # + f32 accumulator + one-hot chunk intermediates, with headroom.
    tab_itemsize = packed.packed.dtype.itemsize
    needed = (c_pad * tile_d * tab_itemsize          # table tile (Buffered(1))
              + 2 * tile_b * tile_d * 4              # out tile, double-buffered
              + 2 * tile_b * F * 4                   # idx tile, double-buffered
              + tile_b * tile_d * 4                  # f32 accumulator
              + 4 * tile_b * c_chunk * 4)            # one-hot / compare intermediates
    vmem_limit = int(min(max(2 * needed, 16 << 20), 100 << 20))

    kernel = functools.partial(_embedder_kernel, c_chunk=c_chunk)
    out = pl.pallas_call(
        kernel,
        out_shape=jax.ShapeDtypeStruct((b_pad, d_pad), jnp.float32),
        grid=(d_pad // tile_d, b_pad // tile_b),      # D outer, batch inner
        in_specs=[
            pl.BlockSpec((tile_b, F), lambda d, b: (b, 0)),
            # Table block only changes with the (outer) D axis -> default double
            # buffering is pure VMEM waste; single-buffer it.
            pl.BlockSpec((c_pad, tile_d), lambda d, b: (0, d),
                         pipeline_mode=pl.Buffered(1)),
        ],
        out_specs=pl.BlockSpec((tile_b, tile_d), lambda d, b: (b, d)),
        compiler_params=pltpu.CompilerParams(
            dimension_semantics=("parallel", "parallel"),
            vmem_limit_bytes=vmem_limit,
        ),
    )(idx, packed.packed)

    # Only slice when padding was actually added (avoids an extra HBM copy otherwise).
    if b_pad != B or d_pad != total_dim:
        out = out[:B, :total_dim]
    return out


def _reference(t_features, tables):
    if len(tables) == 0:
        return t_features
    parts = [jnp.take(t, t_features[:, i], axis=0) for i, t in enumerate(tables)]
    return jnp.concatenate(parts, axis=1)


if __name__ == "__main__":
    # Module config: ls_n_cat_n_embd = [(7, 8), (11, 16), (5, 8)] -> total_dim = 32
    ls_n_cat_n_embd = [(7, 8), (11, 16), (5, 8)]
    B = 8
    F = len(ls_n_cat_n_embd)

    key = jax.random.PRNGKey(0)
    keys = jax.random.split(key, F + 1)
    # Deterministic parameter init, matching nn.Embedding default N(0, 1).
    tables = [
        jax.random.normal(keys[i], (n_cat, n_embd), dtype=jnp.float32)
        for i, (n_cat, n_embd) in enumerate(ls_n_cat_n_embd)
    ]
    # Categorical feature indices [B, F] (PyTorch does .long(); int32 here).
    max_cats = jnp.array([n_cat for n_cat, _ in ls_n_cat_n_embd], dtype=jnp.int32)
    t_features = jax.random.randint(keys[F], (B, F), 0, 1_000_000, dtype=jnp.int32)
    t_features = t_features % max_cats[None, :]

    packed = pack_embedding_tables(tables)            # done ONCE at parameter-init time
    out = multi_feature_embed(t_features, packed)
    out = jax.block_until_ready(out)

    ref = _reference(t_features, tables)
    assert out.shape == (B, sum(e for _, e in ls_n_cat_n_embd))
    assert jnp.allclose(out, ref, atol=1e-5, rtol=1e-5), "mismatch vs reference"
    print("KERNEL_OK")
</pallas_src>

<mosaic_0001>
module attributes {stable_mosaic.version = 11 : i64} {
  func.func @_embedder_kernel(%arg0: i32, %arg1: i32, %arg2: memref<8x3xi32, #tpu.memory_space<vmem>>, %arg3: memref<24x128xf32, #tpu.memory_space<vmem>>, %arg4: memref<8x128xf32, #tpu.memory_space<vmem>>) attributes {dimension_semantics = [#tpu.dimension_semantics<parallel>, #tpu.dimension_semantics<parallel>], iteration_bounds = array<i64: 1, 1>, scalar_prefetch = 0 : i64, scratch_operands = 0 : i64, tpu.core_type = #tpu.core_type<tc>, window_params = [{transform_indices = @transform_0, window_bounds = array<i64: 8, 3>}, {pipeline_mode = #tpu.pipeline_mode<synchronous>, transform_indices = @transform_1, window_bounds = array<i64: 24, 128>}, {transform_indices = @transform_2, window_bounds = array<i64: 8, 128>}]} {
    %c0 = arith.constant 0 : index
    %c0_0 = arith.constant 0 : index
    %0 = vector.load %arg2[%c0, %c0_0] : memref<8x3xi32, #tpu.memory_space<vmem>>, vector<8x3xi32>
    %1 = tpu.iota {dimensions = array<i32: 1>} : vector<8x24xi32>
    %c0_i32 = arith.constant 0 : i32
    %2 = vector.broadcast %c0_i32 : i32 to vector<8x24xi32>
    %3 = arith.addi %1, %2 : vector<8x24xi32>
    %4 = vector.extract_strided_slice %0 {offsets = [0, 0], sizes = [8, 1], strides = [1, 1]} : vector<8x3xi32> to vector<8x1xi32>
    %5 = vector.broadcast %4 : vector<8x1xi32> to vector<8x24xi32>
    %6 = arith.cmpi eq, %3, %5 : vector<8x24xi32>
    %7 = arith.extui %6 : vector<8x24xi1> to vector<8x24xi32>
    %8 = arith.sitofp %7 : vector<8x24xi32> to vector<8x24xf32>
    %9 = vector.extract_strided_slice %0 {offsets = [0, 1], sizes = [8, 1], strides = [1, 1]} : vector<8x3xi32> to vector<8x1xi32>
    %10 = vector.broadcast %9 : vector<8x1xi32> to vector<8x24xi32>
    %11 = arith.cmpi eq, %3, %10 : vector<8x24xi32>
    %12 = arith.extui %11 : vector<8x24xi1> to vector<8x24xi32>
    %13 = arith.sitofp %12 : vector<8x24xi32> to vector<8x24xf32>
    %14 = arith.addf %8, %13 : vector<8x24xf32>
    %15 = vector.extract_strided_slice %0 {offsets = [0, 2], sizes = [8, 1], strides = [1, 1]} : vector<8x3xi32> to vector<8x1xi32>
    %16 = vector.broadcast %15 : vector<8x1xi32> to vector<8x24xi32>
    %17 = arith.cmpi eq, %3, %16 : vector<8x24xi32>
    %18 = arith.extui %17 : vector<8x24xi1> to vector<8x24xi32>
    %19 = arith.sitofp %18 : vector<8x24xi32> to vector<8x24xf32>
    %20 = arith.addf %14, %19 : vector<8x24xf32>
    %c0_1 = arith.constant 0 : index
    %c0_2 = arith.constant 0 : index
    %21 = vector.load %arg3[%c0_1, %c0_2] : memref<24x128xf32, #tpu.memory_space<vmem>>, vector<24x128xf32>
    %cst = arith.constant dense<0.000000e+00> : vector<8x128xf32>
    %22 = tpu.matmul %20, %21, %cst {dimension_numbers = #tpu.dot_dimension_numbers<[1], [0], [0], [1], [0, 0, 1, 1], [], []>} : vector<8x24xf32>, vector<24x128xf32>, vector<8x128xf32> -> vector<8x128xf32>
    %c0_3 = arith.constant 0 : index
    %c0_4 = arith.constant 0 : index
    %23 = vector.load %arg4[%c0_3, %c0_4] : memref<8x128xf32, #tpu.memory_space<vmem>>, vector<8x128xf32>
    tpu.vector_store %arg4[%c0_3, %c0_4], %22 {strides = array<i32>} : memref<8x128xf32, #tpu.memory_space<vmem>>, vector<8x128xf32>,
    return
  }
  func.func @transform_0(%arg0: i32, %arg1: i32) -> (i32, i32) {
    %c0_i32 = arith.constant 0 : i32
    %c0_i32_0 = arith.constant 0 : i32
    return %arg1, %c0_i32 : i32, i32
  }
  func.func @transform_1(%arg0: i32, %arg1: i32) -> (i32, i32) {
    %c0_i32 = arith.constant 0 : i32
    %c0_i32_0 = arith.constant 0 : i32
    return %c0_i32, %arg0 : i32, i32
  }
  func.func @transform_2(%arg0: i32, %arg1: i32) -> (i32, i32) {
    %c0_i32 = arith.constant 0 : i32
    return %arg1, %arg0 : i32, i32
  }
}

</mosaic_0001>

<bundles_post_ra>
// kernel: tpu_custom_call.1
= control target key start
LH: loop header
LB: loop body
LE: loop exit
PB: predicated region body
PF: predicated region fallthrough
CT: control target
= control target key end

     0   :  { %7 = vsyncpa [#allocation3], 0  ;;  %s249_s0 = inlined_call_operand.vmem [shape: s32[8,3], index: 0, kind: input, shape index: {}]   ;;  %s250_s1 = inlined_call_operand.hbm [shape: f32[24,128], index: 1, kind: input, shape index: {}]   ;;  %s251_s2 = inlined_call_operand.hbm [shape: f32[8,128], index: 2, kind: output, shape index: {}]  }
   0x1   :  { %8 = vsyncpa [#allocation4], 0  ;;  %s216_s9 = smov [#allocation2]  }
   0x2   :  { %s16_s10 = sshll.u32 %s216_s9, 4  ;;  %s17_s10 = int_to_ptr.vmem [resolvable:$true] %s16_s10 }
   0x3   :  { %s180_s11 = scalar_lea.vmem %s17_s10, 384  ;;  %p185_p1 = scmp.lt.s32.totalorder %s17_s10, %s17_s10 }
   0x4   :  { %p181_p0 = scmp.ne.s32.totalorder %s17_s10, %s180_s11  ;;  %p186_p2 = scmp.lt.s32.totalorder %s180_s11, %s180_s11 }
   0x6   :  { %p187_p3 = por %p186_p2, %p185_p1 }
   0x8   :  { %p188_p4 = pnand %p187_p3, %p181_p0 }
   0xa   :  { %191 = shalt.err (!%p188_p4)
}
   0xb   :  { %s217_s12 = smov 128   ;;  %s218_s13 = smov 8  }
   0xc   :  { %22 = dma.hbm_to_vmem [thread:$0]  %s250_s1, 384, %s17_s10, [#allocation3], %s217_s12, %s217_s12, %s218_s13  }
   0xd   :  { %212 = dma.done.wait [#allocation3], 384  }
   0xe   :  { %213 = vsyncadd [#allocation3], 4294966912  ;;  %v219_v0 = vmov 0   ;;  %v220_v1 = vmov 2   ;;  %v221_v2 = vmov 0.0   ;;  %v26_v3 = vld [vmem:[%s249_s0] sm:$0xff]  ;;  %v27_v8 = vlaneseq }
   0xf   :  { %168 = vset.pattern.permute.xlu0 %v219_v0  ;;  %170 = vset.pattern.permute.xlu1 %v220_v1  ;;  %v51_v4 = vld [vmem:[#allocation2 + $0x10] sm:$0xff]  ;;  %v50_v5 = vld [vmem:[#allocation2 + $0x8] sm:$0xff]  ;;  %v222_v6 = vmov 1   ;;  %v49_v7 = vld [vmem:[#allocation2] sm:$0xff]  ;;  %vm223_vm0 = vmmov 0   ;;  %vm52_vm4 = vcmask 195584  }
  0x10   :  { %150 = vmatprep.subr.mxu0 %v221_v2  ;;  %30 = vperm.xlu0 %168, %v26_v3   ;;  %v28_v9 = vand.u32 127, %v27_v8  ;;  %s224_s0 = smov [#allocation5]  }
  0x11   :  { %43 = vperm.xlu1 %170, %v26_v3   ;;  %151 = vmatpush3.msra.mxu0 %v51_v4  ;;  %s133_s1 = sshll.u32 %s224_s0, 4  ;;  %s134_s1 = int_to_ptr.vmem [resolvable:$true] %s133_s1 }
  0x12   :  { %152 = vmatprep.subr.mxu0 %v221_v2  ;;  %156 = vmatprep.mubr.msk.f32.mxu0 %vm223_vm0, %v221_v2  ;;  %s192_s18 = scalar_lea.vmem %s134_s1, 128  ;;  %p197_p6 = scmp.lt.s32.totalorder %s134_s1, %s134_s1 }
  0x13   :  { %153 = vmatpush3.msra.mxu0 %v50_v5  ;;  %p193_p5 = scmp.ne.s32.totalorder %s134_s1, %s192_s18  ;;  %p198_p7 = scmp.lt.s32.totalorder %s192_s18, %s192_s18 }
  0x14   :  { %169 = vset.pattern.permute.xlu0 %v222_v6  ;;  %154 = vmatprep.subr.mxu0 %v221_v2 }
  0x15   :  { %36 = vperm.xlu0 %169, %v26_v3   ;;  %155 = vmatpush3.msra.mxu0 %v49_v7  ;;  %p199_p8 = por %p198_p7, %p197_p6 }
  0x17   :  { %p200_p9 = pnand %p199_p8, %p193_p5 }
  0x19   :  { %171 = vset.pattern.permute.xlu0 %v220_v1 }
  0x8b   :  { %v31_v10 = vpop.permute.xlu0 %30 }
  0x8c   :  { %v44_v11 = vpop.permute.xlu1 %43  ;;  %vm32_vm1 = vcmp.eq.s32.totalorder %v28_v9, %v31_v10 }
  0x8d   :  { %vm45_vm2 = vcmp.eq.s32.totalorder %v28_v9, %v44_v11  ;;  %v142_v13 = vsel %vm32_vm1, 1.0, %v221_v2 }
  0x8e   :  { %v144_v15 = vsel %vm45_vm2, 1.0, %v221_v2 }
  0x90   :  { %v37_v12 = vpop.permute.xlu0 %36 }
  0x91   :  { %vm38_vm3 = vcmp.eq.s32.totalorder %v28_v9, %v37_v12 }
  0x92   :  { %v143_v14 = vsel %vm38_vm3, 1.0, %v221_v2 }
  0x93   :  { %v41_v16 = vadd.f32 %v143_v14, %v142_v13 }
  0x95   :  { %v48_v17 = vadd.f32 %v144_v15, %v41_v16 }
  0x97   :  { %157 = vmatmul.mubr.msk.f32.vlgmr.msra.gmra.mxu0 %vm52_vm4, %v48_v17 }
 0x157   :  { %v122_v18 = vpop.f32.mrf.mxu0 }
 0x158   :  { %126 = vst [vmem:[#allocation5] sm:$0xff] %v122_v18 }
 0x159   :  { %v158_v19 = vpop.f32.mrf.mxu0 }
 0x15a   :  { %203 = shalt.err (!%p200_p9)
}
 0x15b   :  { %136 = dma.vmem_to_hbm [thread:$0]  %s134_s1, 128, %s251_s2, [#allocation4]  }
 0x15c   :  { %214 = dma.done.wait [#allocation4], 128  }
 0x15d   :  { %215 = vsyncadd [#allocation4], 4294967168 }
 0x15e   :  { %140 = vsyncpa [#allocation3], 1 }
 0x15f   :  { %141 = vsyncpa [#allocation4], 1 }

</bundles_post_ra>
